<compile_context>
chip_gen: v7x
topology: tpu7x:2x2x1
jax: 0.10.0
libtpu: 0.0.40
codegen_flags: <defaults>
</compile_context>

<pallas_src>
import functools

import jax
import jax.numpy as jnp
from jax import lax
from jax.experimental import pallas as pl
from jax.experimental.pallas import tpu as pltpu

_LANE = 128
_SUBLANE = 8


def _round_up(v: int, m: int) -> int:
    return ((v + m - 1) // m) * m


def _log_ratios(r_ref, g_ref, b_ref):
    """w1 = log r / log g, w2 = log g / log b, w3 = log b / log r for one tile."""
    lr = jnp.log(r_ref[...])
    lg = jnp.log(g_ref[...])
    lb = jnp.log(b_ref[...])
    # TODO(synk): on v6e/v7x (EUP-slot bound) try pl.reciprocal(approx=True) +
    #             one Newton-Raphson step for the three divides (re-check 1e-5).
    return lr / lg, lg / lb, lb / lr


def _accumulate_sums(s_ref, w1, w2, w3, t, *, n_tiles, tile_rows, hw, needs_mask):
    """Accumulate per-lane sums of w1/w2/w3 into the (3, 128) accumulator ref."""

    def add(a1, a2, a3):
        s_ref[0:1] += jnp.sum(a1, axis=0, keepdims=True)
        s_ref[1:2] += jnp.sum(a2, axis=0, keepdims=True)
        s_ref[2:3] += jnp.sum(a3, axis=0, keepdims=True)

    if not needs_mask:
        add(w1, w2, w3)
        return

    # Padding / block overhang only ever lives in the last tile, so the iota +
    # compare + selects are gated to that single grid step.
    last = t == n_tiles - 1

    @pl.when(jnp.logical_not(last))
    def _():
        add(w1, w2, w3)

    @pl.when(last)
    def _():
        row = lax.broadcasted_iota(jnp.int32, (tile_rows, _LANE), 0) + t * tile_rows
        col = lax.broadcasted_iota(jnp.int32, (tile_rows, _LANE), 1)
        valid = (row * _LANE + col) < hw
        zero = jnp.float32(0.0)
        add(jnp.where(valid, w1, zero),
            jnp.where(valid, w2, zero),
            jnp.where(valid, w3, zero))


# ---------------------------------------------------------------------------
# Fused single-call kernel: phase 0 = compute w + sums, phase 1 = emit k.
# ---------------------------------------------------------------------------
def _fused_kernel(r_ref, g_ref, b_ref, o_ref, w1_s, w2_s, w3_s, s_ref, m_ref, *,
                  n_tiles, tile_rows, hw, needs_mask):
    phase = pl.program_id(1)
    t = pl.program_id(2)

    @pl.when(phase == 0)
    def _compute_and_sum():
        @pl.when(t == 0)
        def _init():
            s_ref[...] = jnp.zeros_like(s_ref)

        w1, w2, w3 = _log_ratios(r_ref, g_ref, b_ref)
        w1_s[t] = w1           # keep w resident in VMEM for the emit phase
        w2_s[t] = w2
        w3_s[t] = w3
        _accumulate_sums(s_ref, w1, w2, w3, t, n_tiles=n_tiles,
                         tile_rows=tile_rows, hw=hw, needs_mask=needs_mask)

    @pl.when(phase == 1)
    def _emit():
        @pl.when(t == 0)
        def _means():
            # Hoisted: one cross-lane (XLU) reduce per image, not per tile.
            m_ref[...] = jnp.broadcast_to(
                jnp.sum(s_ref[...], axis=1, keepdims=True) * jnp.float32(1.0 / hw),
                m_ref.shape)

        d1 = w1_s[t] - m_ref[0:1]
        d2 = w2_s[t] - m_ref[1:2]
        d3 = w3_s[t] - m_ref[2:3]
        o_ref[...] = d1 * d1 + d2 * d2 + d3 * d3


def _tloss_fused(x4, N, rows, tile_rows, n_tiles, hw, needs_mask, vmem_limit):
    def chan_spec(c):
        def imap(n, p, t):
            # Phase 1 pins the block index to the last phase-0 tile, so no
            # input DMA is issued while k is emitted from the VMEM w scratch:
            # inputs are read from HBM exactly once per pixel.
            return (n, c, t * (1 - p) + (n_tiles - 1) * p, 0)
        return pl.BlockSpec((None, None, tile_rows, _LANE), imap)

    # Phase 0 parks the output on block (n, 0); it is only flushed to HBM after
    # phase 1 has written it, so every output block is written exactly once.
    out_spec = pl.BlockSpec((None, tile_rows, _LANE), lambda n, p, t: (n, t * p, 0))

    return pl.pallas_call(
        functools.partial(_fused_kernel, n_tiles=n_tiles, tile_rows=tile_rows,
                          hw=hw, needs_mask=needs_mask),
        out_shape=jax.ShapeDtypeStruct((N, rows, _LANE), jnp.float32),
        grid_spec=pltpu.PrefetchScalarGridSpec(
            num_scalar_prefetch=0,
            grid=(N, 2, n_tiles),
            in_specs=[chan_spec(0), chan_spec(1), chan_spec(2)],
            out_specs=out_spec,
            scratch_shapes=[
                pltpu.VMEM((n_tiles, tile_rows, _LANE), jnp.float32),  # w1
                pltpu.VMEM((n_tiles, tile_rows, _LANE), jnp.float32),  # w2
                pltpu.VMEM((n_tiles, tile_rows, _LANE), jnp.float32),  # w3
                pltpu.VMEM((3, _LANE), jnp.float32),                   # per-lane sums
                pltpu.VMEM((3, _LANE), jnp.float32),                   # broadcast means
            ]),
        compiler_params=pltpu.CompilerParams(
            dimension_semantics=("parallel", "arbitrary", "arbitrary"),
            vmem_limit_bytes=vmem_limit),
    )(x4, x4, x4)


# ---------------------------------------------------------------------------
# Two-pass fallback for images whose whole-image w scratch would not fit VMEM.
# ---------------------------------------------------------------------------
def _sum_kernel(r_ref, g_ref, b_ref, s_ref, *, n_tiles, tile_rows, hw, needs_mask):
    t = pl.program_id(1)

    @pl.when(t == 0)
    def _init():
        s_ref[...] = jnp.zeros_like(s_ref)

    w1, w2, w3 = _log_ratios(r_ref, g_ref, b_ref)
    _accumulate_sums(s_ref, w1, w2, w3, t, n_tiles=n_tiles,
                     tile_rows=tile_rows, hw=hw, needs_mask=needs_mask)


def _emit_kernel(r_ref, g_ref, b_ref, s_ref, o_ref, *, hw):
    # TODO(synk): on v6e/v7x the recompute below could instead read w1/w2/w3
    #             materialized by pass 1 (extra 12 B/px HBM, saves 3 logs +
    #             3 divides); the fused path already covers common sizes.
    m = jnp.sum(s_ref[...], axis=1, keepdims=True) * jnp.float32(1.0 / hw)  # (3, 1)
    w1, w2, w3 = _log_ratios(r_ref, g_ref, b_ref)
    d1 = w1 - m[0:1]
    d2 = w2 - m[1:2]
    d3 = w3 - m[2:3]
    o_ref[...] = d1 * d1 + d2 * d2 + d3 * d3


def _tloss_two_pass(x4, N, rows, tile_rows, n_tiles, hw, needs_mask):
    vmem_limit = 32 * 1024 * 1024

    def chan_spec(c):
        return pl.BlockSpec((None, None, tile_rows, _LANE),
                            lambda n, t, c=c: (n, c, t, 0))

    sum_spec = pl.BlockSpec((None, 3, _LANE), lambda n, t: (n, 0, 0))

    s = pl.pallas_call(
        functools.partial(_sum_kernel, n_tiles=n_tiles, tile_rows=tile_rows,
                          hw=hw, needs_mask=needs_mask),
        out_shape=jax.ShapeDtypeStruct((N, 3, _LANE), jnp.float32),
        grid_spec=pltpu.PrefetchScalarGridSpec(
            num_scalar_prefetch=0,
            grid=(N, n_tiles),
            in_specs=[chan_spec(0), chan_spec(1), chan_spec(2)],
            out_specs=sum_spec),
        compiler_params=pltpu.CompilerParams(
            dimension_semantics=("parallel", "arbitrary"),
            vmem_limit_bytes=vmem_limit),
    )(x4, x4, x4)

    return pl.pallas_call(
        functools.partial(_emit_kernel, hw=hw),
        out_shape=jax.ShapeDtypeStruct((N, rows, _LANE), jnp.float32),
        grid_spec=pltpu.PrefetchScalarGridSpec(
            num_scalar_prefetch=0,
            grid=(N, n_tiles),
            in_specs=[chan_spec(0), chan_spec(1), chan_spec(2), sum_spec],
            out_specs=pl.BlockSpec((None, tile_rows, _LANE), lambda n, t: (n, t, 0))),
        compiler_params=pltpu.CompilerParams(
            dimension_semantics=("parallel", "parallel"),
            vmem_limit_bytes=vmem_limit),
    )(x4, x4, x4, s)


# ---------------------------------------------------------------------------
# Public wrapper.
# ---------------------------------------------------------------------------
def tloss(x: jax.Array, *, max_tile_rows: int = 1024,
          fused_vmem_budget: int = 40 * 1024 * 1024) -> jax.Array:
    """x: (N, 3, H, W), strictly positive. Returns k with shape (N, 1, H, W)."""
    N, C, H, W = x.shape
    assert C == 3, "TLoss expects 3 channels (r, g, b)"
    hw = H * W
    rows = -(-hw // _LANE)

    # TODO(synk): for bf16 activations feed bf16 slabs and upcast in-kernel
    #             (halves input HBM bytes on v5e/v6e).
    x = x.astype(jnp.float32)

    if hw % _LANE == 0:
        # Common case: free reshape; channels are selected purely by BlockSpec
        # index maps, so no wrapper-side split/pad copies hit HBM.
        x4 = x.reshape(N, C, rows, _LANE)
    else:
        # Pad the flattened spatial axis with 2.0 (finite, nonzero log); pads
        # are masked out of the sums and sliced off the output.
        pad = rows * _LANE - hw
        x4 = jnp.pad(x.reshape(N, C, hw), ((0, 0), (0, 0), (0, pad)),
                     constant_values=2.0).reshape(N, C, rows, _LANE)

    if rows <= max_tile_rows:
        tile_rows, n_tiles = rows, 1
    else:
        tile_rows = _round_up(max_tile_rows, _SUBLANE)
        n_tiles = -(-rows // tile_rows)
    # Mask needed iff the tiled extent overshoots hw (wrapper pad and/or a
    # partial last block whose OOB region is garbage / dropped on writeback).
    needs_mask = n_tiles * tile_rows * _LANE != hw

    block_bytes = tile_rows * _LANE * 4
    fused_bytes = 3 * n_tiles * block_bytes        # whole-image w1/w2/w3 scratch
    fused_bytes += (3 + 1) * 2 * block_bytes       # double-buffered in/out tiles
    fused_bytes += 2 << 20                         # sums/means + headroom

    if fused_bytes <= fused_vmem_budget:
        vmem_limit = max(32 * 1024 * 1024, fused_bytes)
        k = _tloss_fused(x4, N, rows, tile_rows, n_tiles, hw, needs_mask,
                         vmem_limit)
    else:
        # TODO(synk): v7x megacore — for small N shard the tile axis of pass 1
        #             across the two TensorCores with per-core partial sums.
        k = _tloss_two_pass(x4, N, rows, tile_rows, n_tiles, hw, needs_mask)

    return k.reshape(N, rows * _LANE)[:, :hw].reshape(N, 1, H, W)


def _tloss_ref(x):
    lx = jnp.log(x.astype(jnp.float32))
    r, g, b = lx[:, 0:1], lx[:, 1:2], lx[:, 2:3]
    w1, w2, w3 = r / g, g / b, b / r
    m1 = jnp.mean(w1, axis=(2, 3), keepdims=True)
    m2 = jnp.mean(w2, axis=(2, 3), keepdims=True)
    m3 = jnp.mean(w3, axis=(2, 3), keepdims=True)
    return (w1 - m1) ** 2 + (w2 - m2) ** 2 + (w3 - m3) ** 2


if __name__ == "__main__":
    key = jax.random.PRNGKey(0)
    k1, k2, k3 = jax.random.split(key, 3)

    # 1) Main small case: hw % 128 == 0 -> zero-copy channel slabs, fused path.
    x = jax.random.uniform(k1, (2, 3, 16, 16), jnp.float32, minval=0.1, maxval=0.9)
    out = tloss(x)
    jax.block_until_ready(out)
    assert out.shape == (2, 1, 16, 16)
    assert jnp.allclose(out, _tloss_ref(x), rtol=1e-5, atol=1e-5)

    # 2) hw % 128 != 0 -> wrapper pad path + last-tile mask.
    x = jax.random.uniform(k2, (1, 3, 20, 20), jnp.float32, minval=0.1, maxval=0.9)
    out = tloss(x)
    jax.block_until_ready(out)
    assert jnp.allclose(out, _tloss_ref(x), rtol=1e-5, atol=1e-5)

    # 3) Multi-tile (with a partial/overhang last block) fused path and the
    #    forced two-pass fallback on the same input.
    x = jax.random.uniform(k3, (2, 3, 48, 48), jnp.float32, minval=0.1, maxval=0.9)
    ref = _tloss_ref(x)
    out_f = tloss(x, max_tile_rows=8)
    out_t = tloss(x, max_tile_rows=8, fused_vmem_budget=0)
    jax.block_until_ready((out_f, out_t))
    assert jnp.allclose(out_f, ref, rtol=1e-5, atol=1e-5)
    assert jnp.allclose(out_t, ref, rtol=1e-5, atol=1e-5)

    print("KERNEL_OK")
</pallas_src>

<mosaic_0001>
module attributes {stable_mosaic.version = 11 : i64} {
  func.func @_fused_kernel(%arg0: i32, %arg1: i32, %arg2: i32, %arg3: memref<1x1x2x128xf32, #tpu.memory_space<vmem>>, %arg4: memref<1x1x2x128xf32, #tpu.memory_space<vmem>>, %arg5: memref<1x1x2x128xf32, #tpu.memory_space<vmem>>, %arg6: memref<1x2x128xf32, #tpu.memory_space<vmem>>, %arg7: memref<1x2x128xf32, #tpu.memory_space<vmem>>, %arg8: memref<1x2x128xf32, #tpu.memory_space<vmem>>, %arg9: memref<1x2x128xf32, #tpu.memory_space<vmem>>, %arg10: memref<3x128xf32, #tpu.memory_space<vmem>>, %arg11: memref<3x128xf32, #tpu.memory_space<vmem>>) attributes {dimension_semantics = [#tpu.dimension_semantics<parallel>, #tpu.dimension_semantics<arbitrary>, #tpu.dimension_semantics<arbitrary>], iteration_bounds = array<i64: 2, 2, 1>, scalar_prefetch = 0 : i64, scratch_operands = 5 : i64, tpu.core_type = #tpu.core_type<tc>, window_params = [{transform_indices = @transform_0, window_bounds = array<i64: 1, 1, 2, 128>}, {transform_indices = @transform_1, window_bounds = array<i64: 1, 1, 2, 128>}, {transform_indices = @transform_2, window_bounds = array<i64: 1, 1, 2, 128>}, {transform_indices = @transform_3, window_bounds = array<i64: 1, 2, 128>}]} {
    %c0_i32 = arith.constant 0 : i32
    %0 = arith.cmpi eq, %arg1, %c0_i32 : i32
    %1 = arith.extui %0 : i1 to i32
    %c0_i32_0 = arith.constant 0 : i32
    %2 = arith.cmpi ne, %1, %c0_i32_0 : i32
    scf.if %2 {
      %c0_i32_2 = arith.constant 0 : i32
      %6 = arith.cmpi eq, %arg2, %c0_i32_2 : i32
      %7 = arith.extui %6 : i1 to i32
      %c0_i32_3 = arith.constant 0 : i32
      %8 = arith.cmpi ne, %7, %c0_i32_3 : i32
      scf.if %8 {
        %cst_33 = arith.constant 0.000000e+00 : f32
        %48 = vector.broadcast %cst_33 : f32 to vector<3x128xf32>
        %c0_34 = arith.constant 0 : index
        %c0_35 = arith.constant 0 : index
        %49 = vector.load %arg10[%c0_34, %c0_35] : memref<3x128xf32, #tpu.memory_space<vmem>>, vector<3x128xf32>
        tpu.vector_store %arg10[%c0_34, %c0_35], %48 {strides = array<i32>} : memref<3x128xf32, #tpu.memory_space<vmem>>, vector<3x128xf32>,
      } else {
      }
      %c0 = arith.constant 0 : index
      %c0_4 = arith.constant 0 : index
      %c0_5 = arith.constant 0 : index
      %c0_6 = arith.constant 0 : index
      %9 = vector.load %arg3[%c0, %c0_4, %c0_5, %c0_6] : memref<1x1x2x128xf32, #tpu.memory_space<vmem>>, vector<1x1x2x128xf32>
      %10 = vector.shape_cast %9 : vector<1x1x2x128xf32> to vector<2x128xf32>
      %11 = math.log %10 : vector<2x128xf32>
      %c0_7 = arith.constant 0 : index
      %c0_8 = arith.constant 0 : index
      %c0_9 = arith.constant 0 : index
      %c0_10 = arith.constant 0 : index
      %12 = vector.load %arg4[%c0_7, %c0_8, %c0_9, %c0_10] : memref<1x1x2x128xf32, #tpu.memory_space<vmem>>, vector<1x1x2x128xf32>
      %13 = vector.shape_cast %12 : vector<1x1x2x128xf32> to vector<2x128xf32>
      %14 = math.log %13 : vector<2x128xf32>
      %c0_11 = arith.constant 0 : index
      %c0_12 = arith.constant 0 : index
      %c0_13 = arith.constant 0 : index
      %c0_14 = arith.constant 0 : index
      %15 = vector.load %arg5[%c0_11, %c0_12, %c0_13, %c0_14] : memref<1x1x2x128xf32, #tpu.memory_space<vmem>>, vector<1x1x2x128xf32>
      %16 = vector.shape_cast %15 : vector<1x1x2x128xf32> to vector<2x128xf32>
      %17 = math.log %16 : vector<2x128xf32>
      %18 = arith.divf %11, %14 : vector<2x128xf32>
      %19 = arith.divf %14, %17 : vector<2x128xf32>
      %20 = arith.divf %17, %11 : vector<2x128xf32>
      %21 = arith.index_cast %arg2 : i32 to index
      %c0_15 = arith.constant 0 : index
      %c0_16 = arith.constant 0 : index
      %22 = vector.load %arg7[%21, %c0_15, %c0_16] : memref<1x2x128xf32, #tpu.memory_space<vmem>>, vector<1x2x128xf32>
      %23 = vector.shape_cast %22 : vector<1x2x128xf32> to vector<2x128xf32>
      %24 = vector.shape_cast %18 : vector<2x128xf32> to vector<1x2x128xf32>
      tpu.vector_store %arg7[%21, %c0_15, %c0_16], %24 {strides = array<i32>} : memref<1x2x128xf32, #tpu.memory_space<vmem>>, vector<1x2x128xf32>,
      %25 = arith.index_cast %arg2 : i32 to index
      %c0_17 = arith.constant 0 : index
      %c0_18 = arith.constant 0 : index
      %26 = vector.load %arg8[%25, %c0_17, %c0_18] : memref<1x2x128xf32, #tpu.memory_space<vmem>>, vector<1x2x128xf32>
      %27 = vector.shape_cast %26 : vector<1x2x128xf32> to vector<2x128xf32>
      %28 = vector.shape_cast %19 : vector<2x128xf32> to vector<1x2x128xf32>
      tpu.vector_store %arg8[%25, %c0_17, %c0_18], %28 {strides = array<i32>} : memref<1x2x128xf32, #tpu.memory_space<vmem>>, vector<1x2x128xf32>,
      %29 = arith.index_cast %arg2 : i32 to index
      %c0_19 = arith.constant 0 : index
      %c0_20 = arith.constant 0 : index
      %30 = vector.load %arg9[%29, %c0_19, %c0_20] : memref<1x2x128xf32, #tpu.memory_space<vmem>>, vector<1x2x128xf32>
      %31 = vector.shape_cast %30 : vector<1x2x128xf32> to vector<2x128xf32>
      %32 = vector.shape_cast %20 : vector<2x128xf32> to vector<1x2x128xf32>
      tpu.vector_store %arg9[%29, %c0_19, %c0_20], %32 {strides = array<i32>} : memref<1x2x128xf32, #tpu.memory_space<vmem>>, vector<1x2x128xf32>,
      %c0_21 = arith.constant 0 : index
      %c0_22 = arith.constant 0 : index
      %33 = vector.load %arg10[%c0_21, %c0_22] : memref<3x128xf32, #tpu.memory_space<vmem>>, vector<1x128xf32>
      %cst = arith.constant dense<0.000000e+00> : vector<128xf32>
      %34 = vector.multi_reduction <add>, %18, %cst [0] : vector<2x128xf32> to vector<128xf32>
      %35 = vector.shape_cast %34 : vector<128xf32> to vector<1x128xf32>
      %36 = arith.addf %33, %35 : vector<1x128xf32>
      %c0_23 = arith.constant 0 : index
      %c0_24 = arith.constant 0 : index
      %37 = vector.load %arg10[%c0_23, %c0_24] : memref<3x128xf32, #tpu.memory_space<vmem>>, vector<1x128xf32>
      tpu.vector_store %arg10[%c0_23, %c0_24], %36 {strides = array<i32>} : memref<3x128xf32, #tpu.memory_space<vmem>>, vector<1x128xf32>,
      %c1 = arith.constant 1 : index
      %c0_25 = arith.constant 0 : index
      %38 = vector.load %arg10[%c1, %c0_25] : memref<3x128xf32, #tpu.memory_space<vmem>>, vector<1x128xf32>
      %cst_26 = arith.constant dense<0.000000e+00> : vector<128xf32>
      %39 = vector.multi_reduction <add>, %19, %cst_26 [0] : vector<2x128xf32> to vector<128xf32>
      %40 = vector.shape_cast %39 : vector<128xf32> to vector<1x128xf32>
      %41 = arith.addf %38, %40 : vector<1x128xf32>
      %c1_27 = arith.constant 1 : index
      %c0_28 = arith.constant 0 : index
      %42 = vector.load %arg10[%c1_27, %c0_28] : memref<3x128xf32, #tpu.memory_space<vmem>>, vector<1x128xf32>
      tpu.vector_store %arg10[%c1_27, %c0_28], %41 {strides = array<i32>} : memref<3x128xf32, #tpu.memory_space<vmem>>, vector<1x128xf32>,
      %c2 = arith.constant 2 : index
      %c0_29 = arith.constant 0 : index
      %43 = vector.load %arg10[%c2, %c0_29] : memref<3x128xf32, #tpu.memory_space<vmem>>, vector<1x128xf32>
      %cst_30 = arith.constant dense<0.000000e+00> : vector<128xf32>
      %44 = vector.multi_reduction <add>, %20, %cst_30 [0] : vector<2x128xf32> to vector<128xf32>
      %45 = vector.shape_cast %44 : vector<128xf32> to vector<1x128xf32>
      %46 = arith.addf %43, %45 : vector<1x128xf32>
      %c2_31 = arith.constant 2 : index
      %c0_32 = arith.constant 0 : index
      %47 = vector.load %arg10[%c2_31, %c0_32] : memref<3x128xf32, #tpu.memory_space<vmem>>, vector<1x128xf32>
      tpu.vector_store %arg10[%c2_31, %c0_32], %46 {strides = array<i32>} : memref<3x128xf32, #tpu.memory_space<vmem>>, vector<1x128xf32>,
    } else {
    }
    %c1_i32 = arith.constant 1 : i32
    %3 = arith.cmpi eq, %arg1, %c1_i32 : i32
    %4 = arith.extui %3 : i1 to i32
    %c0_i32_1 = arith.constant 0 : i32
    %5 = arith.cmpi ne, %4, %c0_i32_1 : i32
    scf.if %5 {
      %c0_i32_2 = arith.constant 0 : i32
      %6 = arith.cmpi eq, %arg2, %c0_i32_2 : i32
      %7 = arith.extui %6 : i1 to i32
      %c0_i32_3 = arith.constant 0 : i32
      %8 = arith.cmpi ne, %7, %c0_i32_3 : i32
      scf.if %8 {
        %c0_16 = arith.constant 0 : index
        %c0_17 = arith.constant 0 : index
        %35 = vector.load %arg10[%c0_16, %c0_17] : memref<3x128xf32, #tpu.memory_space<vmem>>, vector<3x128xf32>
        %cst = arith.constant dense<0.000000e+00> : vector<3xf32>
        %36 = vector.multi_reduction <add>, %35, %cst [1] : vector<3x128xf32> to vector<3xf32>
        %37 = vector.shape_cast %36 : vector<3xf32> to vector<3x1xf32>
        %cst_18 = arith.constant 3.906250e-03 : f32
        %38 = vector.broadcast %cst_18 : f32 to vector<3x1xf32>
        %39 = arith.mulf %37, %38 : vector<3x1xf32>
        %40 = vector.shape_cast %39 : vector<3x1xf32> to vector<3x1xf32>
        %41 = vector.broadcast %40 : vector<3x1xf32> to vector<3x128xf32>
        %c0_19 = arith.constant 0 : index
        %c0_20 = arith.constant 0 : index
        %42 = vector.load %arg11[%c0_19, %c0_20] : memref<3x128xf32, #tpu.memory_space<vmem>>, vector<3x128xf32>
        tpu.vector_store %arg11[%c0_19, %c0_20], %41 {strides = array<i32>} : memref<3x128xf32, #tpu.memory_space<vmem>>, vector<3x128xf32>,
      } else {
      }
      %9 = arith.index_cast %arg2 : i32 to index
      %c0 = arith.constant 0 : index
      %c0_4 = arith.constant 0 : index
      %10 = vector.load %arg7[%9, %c0, %c0_4] : memref<1x2x128xf32, #tpu.memory_space<vmem>>, vector<1x2x128xf32>
      %11 = vector.shape_cast %10 : vector<1x2x128xf32> to vector<2x128xf32>
      %c0_5 = arith.constant 0 : index
      %c0_6 = arith.constant 0 : index
      %12 = vector.load %arg11[%c0_5, %c0_6] : memref<3x128xf32, #tpu.memory_space<vmem>>, vector<1x128xf32>
      %13 = vector.broadcast %12 : vector<1x128xf32> to vector<2x128xf32>
      %14 = arith.subf %11, %13 : vector<2x128xf32>
      %15 = arith.index_cast %arg2 : i32 to index
      %c0_7 = arith.constant 0 : index
      %c0_8 = arith.constant 0 : index
      %16 = vector.load %arg8[%15, %c0_7, %c0_8] : memref<1x2x128xf32, #tpu.memory_space<vmem>>, vector<1x2x128xf32>
      %17 = vector.shape_cast %16 : vector<1x2x128xf32> to vector<2x128xf32>
      %c1 = arith.constant 1 : index
      %c0_9 = arith.constant 0 : index
      %18 = vector.load %arg11[%c1, %c0_9] : memref<3x128xf32, #tpu.memory_space<vmem>>, vector<1x128xf32>
      %19 = vector.broadcast %18 : vector<1x128xf32> to vector<2x128xf32>
      %20 = arith.subf %17, %19 : vector<2x128xf32>
      %21 = arith.index_cast %arg2 : i32 to index
      %c0_10 = arith.constant 0 : index
      %c0_11 = arith.constant 0 : index
      %22 = vector.load %arg9[%21, %c0_10, %c0_11] : memref<1x2x128xf32, #tpu.memory_space<vmem>>, vector<1x2x128xf32>
      %23 = vector.shape_cast %22 : vector<1x2x128xf32> to vector<2x128xf32>
      %c2 = arith.constant 2 : index
      %c0_12 = arith.constant 0 : index
      %24 = vector.load %arg11[%c2, %c0_12] : memref<3x128xf32, #tpu.memory_space<vmem>>, vector<1x128xf32>
      %25 = vector.broadcast %24 : vector<1x128xf32> to vector<2x128xf32>
      %26 = arith.subf %23, %25 : vector<2x128xf32>
      %27 = arith.mulf %14, %14 : vector<2x128xf32>
      %28 = arith.mulf %20, %20 : vector<2x128xf32>
      %29 = arith.addf %27, %28 : vector<2x128xf32>
      %30 = arith.mulf %26, %26 : vector<2x128xf32>
      %31 = arith.addf %29, %30 : vector<2x128xf32>
      %c0_13 = arith.constant 0 : index
      %c0_14 = arith.constant 0 : index
      %c0_15 = arith.constant 0 : index
      %32 = vector.load %arg6[%c0_13, %c0_14, %c0_15] : memref<1x2x128xf32, #tpu.memory_space<vmem>>, vector<1x2x128xf32>
      %33 = vector.shape_cast %32 : vector<1x2x128xf32> to vector<2x128xf32>
      %34 = vector.shape_cast %31 : vector<2x128xf32> to vector<1x2x128xf32>
      tpu.vector_store %arg6[%c0_13, %c0_14, %c0_15], %34 {strides = array<i32>} : memref<1x2x128xf32, #tpu.memory_space<vmem>>, vector<1x2x128xf32>,
    } else {
    }
    return
  }
  func.func @transform_0(%arg0: i32, %arg1: i32, %arg2: i32) -> (i32, i32, i32, i32) {
    %c1_i32 = arith.constant 1 : i32
    %0 = arith.subi %c1_i32, %arg1 : i32
    %1 = arith.muli %arg2, %0 : i32
    %c0_i32 = arith.constant 0 : i32
    %2 = arith.muli %c0_i32, %arg1 : i32
    %3 = arith.addi %1, %2 : i32
    %c0_i32_0 = arith.constant 0 : i32
    %c0_i32_1 = arith.constant 0 : i32
    %c0_i32_2 = arith.constant 0 : i32
    return %arg0, %c0_i32_0, %3, %c0_i32_1 : i32, i32, i32, i32
  }
  func.func @transform_1(%arg0: i32, %arg1: i32, %arg2: i32) -> (i32, i32, i32, i32) {
    %c1_i32 = arith.constant 1 : i32
    %0 = arith.subi %c1_i32, %arg1 : i32
    %1 = arith.muli %arg2, %0 : i32
    %c0_i32 = arith.constant 0 : i32
    %2 = arith.muli %c0_i32, %arg1 : i32
    %3 = arith.addi %1, %2 : i32
    %c1_i32_0 = arith.constant 1 : i32
    %c0_i32_1 = arith.constant 0 : i32
    %c0_i32_2 = arith.constant 0 : i32
    return %arg0, %c1_i32_0, %3, %c0_i32_1 : i32, i32, i32, i32
  }
  func.func @transform_2(%arg0: i32, %arg1: i32, %arg2: i32) -> (i32, i32, i32, i32) {
    %c1_i32 = arith.constant 1 : i32
    %0 = arith.subi %c1_i32, %arg1 : i32
    %1 = arith.muli %arg2, %0 : i32
    %c0_i32 = arith.constant 0 : i32
    %2 = arith.muli %c0_i32, %arg1 : i32
    %3 = arith.addi %1, %2 : i32
    %c2_i32 = arith.constant 2 : i32
    %c0_i32_0 = arith.constant 0 : i32
    %c0_i32_1 = arith.constant 0 : i32
    return %arg0, %c2_i32, %3, %c0_i32_0 : i32, i32, i32, i32
  }
  func.func @transform_3(%arg0: i32, %arg1: i32, %arg2: i32) -> (i32, i32, i32) {
    %0 = arith.muli %arg2, %arg1 : i32
    %c0_i32 = arith.constant 0 : i32
    %c0_i32_0 = arith.constant 0 : i32
    return %arg0, %0, %c0_i32 : i32, i32, i32
  }
}

</mosaic_0001>

<bundles_post_ra>
// kernel: tpu_custom_call.1
= control target key start
LH: loop header
LB: loop body
LE: loop exit
PB: predicated region body
PF: predicated region fallthrough
CT: control target
= control target key end

     0   :  { %s1204_s0 = inlined_call_operand.hbm [shape: f32[2,3,2,128], index: 0, kind: input, shape index: {}]   ;;  %s1205_s1 = inlined_call_operand.hbm [shape: f32[2,3,2,128], index: 1, kind: input, shape index: {}]   ;;  %s1206_s2 = inlined_call_operand.hbm [shape: f32[2,3,2,128], index: 2, kind: input, shape index: {}]   ;;  %s1207_s3 = inlined_call_operand.hbm [shape: f32[2,2,128], index: 3, kind: output, shape index: {}]  }
   0x1   :  { %1218 = sst [smem:[#allocation24_spill]] %s1204_s0 }
   0x2   :  { %1219 = sst [smem:[#allocation25_spill]] %s1205_s1 }
   0x3   :  { %8 = vsyncpa [#allocation8], 0 }
   0x4   :  { %10 = vsyncpa [#allocation8 + $0x1], 0 }
   0x5   :  { %11 = vsyncpa [#allocation11], 0 }
   0x6   :  { %13 = vsyncpa [#allocation11 + $0x1], 0 }
   0x7   :  { %14 = vsyncpa [#allocation9], 0 }
   0x8   :  { %16 = vsyncpa [#allocation9 + $0x1], 0  ;;  %s938_s12 = smov 0   ;;  %s940_s13 = smov 0  }
   0x9   :  { %s942_s14 = smov 0   ;;  %s944_s15 = smov 0  }
   0xa   :  { %s946_s16 = smov 0   ;;  %s948_s17 = smov 0  }
   0xb   :  { %s950_s18 = smov 0   ;;  %s952_s19 = smov 0  }
   0xc LB: > { %1220 = sst [smem:[#allocation17_spill]] %s891_s14  ;;  %s979_s20 = sadd.s32 4294967295, %s911_s19   ;;  %s911_s19 = sphi %s952_s19, %s22_s19   ;;  %s907_s18 = sphi %s950_s18, %s1250_s18   ;;  %s903_s17 = sphi %s948_s17, %s1249_s17   ;;  %s899_s16 = sphi %s946_s16, %s1248_s16   ;;  %s895_s15 = sphi %s944_s15, %s1247_s15   ;;  %s891_s14 = sphi %s942_s14, %s1246_s14   ;;  %s887_s13 = sphi %s940_s13, %s1252_s13   ;;  %s883_s12 = sphi %s938_s12, %s1251_s12  }
   0xd   : > { %1221 = sst [smem:[#allocation18_spill]] %s903_s17  ;;  %s592_s21 = sadd.s32 4294967294, %s911_s19  }
   0xe   : > { %1222 = sst [smem:[#allocation19_spill]] %s907_s18  ;;  %s37_s22 = sadd.s32 1, %s903_s17 }
   0xf   : > { %s41_s23 = sadd.s32 1, %s907_s18  ;;  %p39_p0 = scmp.ge.s32.totalorder %s37_s22, 2 }
  0x10   : > { %s54_s24 = sadd.s32 1, %s891_s14  ;;  %p61_p1 = scmp.ne.s32.totalorder %s891_s14, %s887_s13 }
  0x11   : > { %p62_p2 = scmp.eq.s32.totalorder %s911_s19, 0  ;;  %s1254_s22 = smov (%p39_p0, %s37_s22), 0 }
  0x12   : > { %1223 = sst [smem:[#allocation20_spill]] %s1254_s22  ;;  %s1256_s23 = smov (!%p39_p0, %s41_s23), %s907_s18 }
  0x13   : > { %p991_p3 = por %p62_p2, %p61_p1  ;;  %p67_p4 = scmp.ne.s32.totalorder %s887_s13, %s883_s12 }
  0x14   : > { %p43_p5 = scmp.ge.s32.totalorder %s1256_s23, 2  ;;  %p68_p6 = scmp.eq.s32.totalorder %s979_s20, 0 }
  0x15   : > { %p159_p7 = scmp.eq.s32.totalorder %s979_s20, 3  ;;  %p165_p8 = scmp.eq.s32.totalorder %s592_s21, 3 }
  0x16   : > { %s1258_s23 = smov (%p43_p5, %s1256_s23), 0  ;;  %p1001_p9 = por %p68_p6, %p67_p4 }
  0x17   : > { %1225 = sst [smem:[#allocation21_spill]] %s1258_s23  ;;  %p1005_p10 = por %p159_p7, %p61_p1 }
  0x18   : > { %s1226_s26 = scalar_select %p1001_p9, 1, 0 }
  0x19   : > { %s1227_s27 = scalar_select %p1005_p10, 1, 0 }
  0x1a   : > { %s49_s28 = ssub.s32 %s907_s18, %s1258_s23  ;;  %p1011_p11 = por %p165_p8, %p67_p4 }
  0x1b   : > { %p52_p12 = scmp.eq.s32.totalorder %s49_s28, 0  ;;  %p638_p13 = scmp.lt.s32.totalorder %s911_s19, 4 }
  0x1c   : > { %s1228_s29 = scalar_select %p1011_p11, 1, 0 }
  0x1d   : > { %s1208_s30 = sand.u32 1, %s891_s14   ;;  %s1025_s6 = smul.u32 96, %s907_s18 }
  0x1e   : > { %1229 = sst [smem:[#allocation22_spill]] %s1228_s29  ;;  %s1022_s5 = sshll.u32 %s1208_s30, 1 }
  0x1f   : > { %s1018_s4 = scalar_select %p52_p12, %s891_s14, %s54_s24  }
  0x20   : > { %p1029_p0 = pnand %p638_p13, %p991_p3  ;;  %s207_s8 = sand.u32 1, %s911_s19  }
  0x21   : > { %1230 = sst [smem:[#allocation23_spill]] %s1018_s4  ;;  %s1232_s1 = sld [smem:[#allocation25_spill]] }
  0x22   : > { %s1231_s7 = scalar_select %p1029_p0, 1, 0 }
  0x23   : > { %s211_s24 = scalar_lea.vmem [#allocation10], %s1022_s5  ;;  %s1044_s25 = scalar_lea.sflag [#allocation11], %s207_s8 }
  0x24   : > { %s223_s28 = sshll.u32 %s211_s24, 4  ;;  %p1049_p3 = pneg %p1029_p0  ;;  %s1041_s28 = int_to_ptr.vmem [resolvable:$true] %s223_s28 }
  0x27   : > { %s483_s11 = scalar_lea.hbm %s1232_s1, %s1025_s6  ;;  %s722_s24 = scalar_lea.hbm %s1232_s1, 192 }
  0x28   : > { %s1038_s21 = scalar_lea.hbm %s483_s11, 32  ;;  %s747_s30 = scalar_lea.hbm %s483_s11, 64 }
  0x29   : > { %p718_p2 = scmp.ne.s32.totalorder %s1038_s21, %s747_s30  ;;  %p723_p6 = scmp.lt.u32.totalorder %s1038_s21, %s1232_s1 }
  0x2a   : > { %p724_p7 = scmp.lt.u32.totalorder %s722_s24, %s747_s30  ;;  %p726_p12 = scmp.lt.u32.totalorder %s747_s30, %s1038_s21 }
  0x2b   : > { %p720_p4 = pnand %p1049_p3, %p718_p2 }
  0x2c   : > { %p725_p8 = por %p724_p7, %p723_p6 }
  0x2d   : > { %p721_p5 = pneg %p720_p4 }
  0x2e   : > { %p727_p13 = por %p726_p12, %p725_p8 }
  0x30   : > { %p728_p1 = pnand %p727_p13, %p721_p5 }
  0x32   : > { %731 = shalt.err (!%p728_p1)
}
  0x33   : > { %s732_s8 = scalar_lea.vmem %s1041_s28, 32  ;;  %s913_s11 = smov [#allocation10]  }
  0x34   : > { %p733_p2 = scmp.ne.s32.totalorder %s1041_s28, %s732_s8  ;;  %s737_s9 = sshll.u32 %s913_s11, 4  ;;  %s738_s9 = int_to_ptr.vmem [resolvable:$false] %s737_s9 }
  0x35   : > { %s739_s18 = scalar_lea.vmem %s738_s9, 64  ;;  %p740_p10 = scmp.lt.s32.totalorder %s1041_s28, %s738_s9 }
  0x36   : > { %p735_p4 = pnand %p733_p2, %p1049_p3  ;;  %p741_p9 = scmp.lt.s32.totalorder %s739_s18, %s732_s8 }
  0x38   : > { %p736_p11 = pneg %p735_p4  ;;  %p742_p6 = por %p741_p9, %p740_p10 }
  0x3a   : > { %p743_p7 = pnand %p742_p6, %p736_p11 }
  0x3c   : > { %746 = shalt.err (!%p743_p7)
}
  0x3d   : > { %630 = dma.hbm_to_vmem [thread:$0]  (!%p1029_p0), %s1038_s21, 32, %s1041_s28, %s1044_s25  }
  0x3e   : > { %p251_p1 = scmp.lt.s32.totalorder %s911_s19, 5  ;;  %p1234_p5 = scmp.ge.s32.totalorder %s911_s19, 1 }
  0x3f   : > { %s1236_s0 = sld [smem:[#allocation24_spill]]  ;;  %s189_s8 = scalar_lea.vmem [#allocation7], %s1022_s5 }
  0x40   : > { %p1076_p8 = pnand %p1234_p5, %p251_p1  ;;  %s200_s11 = sshll.u32 %s189_s8, 4  ;;  %s201_s11 = int_to_ptr.vmem [resolvable:$true] %s200_s11 }
  0x41   : > { %s1237_s9 = sand.u32 1, %s891_s14  }
  0x42   : > { %s1235_s22 = scalar_select %p1076_p8, 1, 0 }
  0x43   : > { %s186_s21 = scalar_lea.sflag [#allocation8], %s1237_s9 }
  0x45   : > { %s1084_s24 = scalar_lea.hbm %s1236_s0, %s1025_s6  ;;  %s753_s30 = scalar_lea.hbm %s1236_s0, 192 }
  0x46   : > { %s748_s28 = scalar_lea.hbm %s1084_s24, 32  ;;  %p754_p12 = scmp.lt.u32.totalorder %s1084_s24, %s1236_s0 }
  0x47   : > { %p749_p9 = scmp.ne.s32.totalorder %s1084_s24, %s748_s28  ;;  %p755_p13 = scmp.lt.u32.totalorder %s753_s30, %s748_s28 }
  0x48   : > { %p757_p4 = scmp.lt.u32.totalorder %s748_s28, %s1084_s24 }
  0x49   : > { %p751_p10 = pnand %p749_p9, %p1049_p3  ;;  %p756_p2 = por %p755_p13, %p754_p12 }
  0x4b   : > { %p752_p11 = pneg %p751_p10  ;;  %p758_p6 = por %p757_p4, %p756_p2 }
  0x4d   : > { %p759_p7 = pnand %p758_p6, %p752_p11 }
  0x4f   : > { %762 = shalt.err (!%p759_p7)
}
  0x50   : > { %s763_s8 = scalar_lea.vmem %s201_s11, 32  ;;  %s914_s9 = smov [#allocation7]  }
  0x51   : > { %p764_p1 = scmp.ne.s32.totalorder %s201_s11, %s763_s8  ;;  %s768_s4 = sshll.u32 %s914_s9, 4  ;;  %s769_s4 = int_to_ptr.vmem [resolvable:$false] %s768_s4 }
  0x52   : > { %s770_s1 = scalar_lea.vmem %s769_s4, 64  ;;  %p771_p10 = scmp.lt.s32.totalorder %s201_s11, %s769_s4 }
  0x53   : > { %p766_p5 = pnand %p764_p1, %p1049_p3  ;;  %p772_p8 = scmp.lt.s32.totalorder %s770_s1, %s763_s8 }
  0x55   : > { %p767_p9 = pneg %p766_p5  ;;  %p773_p0 = por %p772_p8, %p771_p10 }
  0x57   : > { %p774_p12 = pnand %p773_p0, %p767_p9 }
  0x59   : > { %777 = shalt.err (!%p774_p12)
}
  0x5a   : > { %p1238_p13 = scmp.ne.s32.totalorder %s1231_s7, 0  ;;  %s491_s18 = scalar_lea.hbm %s1206_s2, %s1025_s6 }
  0x5b   : > { %s234_s30 = scalar_lea.vmem [#allocation12], %s1022_s5  ;;  %s492_s9 = scalar_lea.hbm %s491_s18, 64 }
  0x5c   : > { %627 = dma.hbm_to_vmem [thread:$0]  (!%p1238_p13), %s1084_s24, 32, %s201_s11, %s186_s21  }
  0x5d   : > { %s246_s10 = sshll.u32 %s234_s30, 4  ;;  %s808_s4 = scalar_lea.hbm %s491_s18, 96  ;;  %s247_s10 = int_to_ptr.vmem [resolvable:$true] %s246_s10 }
  0x5e   : > { %p779_p11 = scmp.ne.s32.totalorder %s492_s9, %s808_s4  ;;  %s783_s0 = scalar_lea.hbm %s1206_s2, 192 }
  0x5f   : > { %p784_p2 = scmp.lt.u32.totalorder %s492_s9, %s1206_s2  ;;  %p785_p4 = scmp.lt.u32.totalorder %s783_s0, %s808_s4 }
  0x60   : > { %p781_p0 = pnand %p779_p11, %p1049_p3  ;;  %p787_p7 = scmp.lt.u32.totalorder %s808_s4, %s492_s9 }
  0x61   : > { %p786_p6 = por %p785_p4, %p784_p2 }
  0x62   : > { %p782_p8 = pneg %p781_p0 }
  0x63   : > { %p788_p1 = por %p787_p7, %p786_p6 }
  0x65   : > { %p789_p5 = pnand %p788_p1, %p782_p8 }
  0x67   : > { %792 = shalt.err (!%p789_p5)
}
  0x68   : > { %s793_s5 = scalar_lea.vmem %s247_s10, 32  ;;  %s915_s6 = smov [#allocation12]  }
  0x69   : > { %p794_p9 = scmp.ne.s32.totalorder %s247_s10, %s793_s5  ;;  %s798_s24 = sshll.u32 %s915_s6, 4  ;;  %s799_s24 = int_to_ptr.vmem [resolvable:$false] %s798_s24 }
  0x6a   : > { %s800_s11 = scalar_lea.vmem %s799_s24, 64  ;;  %p801_p11 = scmp.lt.s32.totalorder %s247_s10, %s799_s24 }
  0x6b   : > { %p796_p10 = pnand %p794_p9, %p1049_p3  ;;  %p802_p0 = scmp.lt.s32.totalorder %s800_s11, %s793_s5 }
  0x6d   : > { %p797_p12 = pneg %p796_p10  ;;  %p803_p13 = por %p802_p0, %p801_p11 }
  0x6f   : > { %p804_p2 = pnand %p803_p13, %p797_p12 }
  0x71   : > { %807 = shalt.err (!%p804_p2)
}
  0x72   : > { %p1239_p4 = scmp.ne.s32.totalorder %s1231_s7, 0  ;;  %p1240_p8 = scmp.ne.s32.totalorder %s1235_s22, 0 }
  0x73   : > { %s1127_s0 = sand.u32 (!%p1240_p8), 1, %s887_s13   ;;  %p1241_p3 = scmp.ne.s32.totalorder (!%p1240_p8), %s1226_s26, 0 }
  0x74   : > { %633 = dma.hbm_to_vmem [thread:$0]  (!%p1239_p4), %s492_s9, 32, %s247_s10, %s1044_s25  }
  0x75   : > { %255 = sbr.rel (%p1240_p8) target bundleno = 369 (0x171), region = 32  ;;  %s1130_s14 = sshll.u32 (!%p1240_p8), %s1127_s0, 1 }
  0x76   : > { %s258_s23 = scalar_lea.sflag (!%p1240_p8), [#allocation8], %s1127_s0  ;;  %s261_s29 = scalar_lea.vmem (!%p1240_p8), [#allocation7], %s1130_s14 }
  0x7c   : > { %870 = dma.done.wait (%p1241_p3), %s258_s23, 32  }
  0x7d   : > { %872 = vsyncadd (%p1241_p3), %s258_s23, 4294967264  ;;  %s266_s7 = sand.u32 1, %s979_s20   ;;  %s270_s22 = scalar_lea.vmem [#allocation10], %s1130_s14 }
  0x7e   : > { %s267_s25 = scalar_lea.sflag [#allocation11], %s266_s7 }
  0x7f   : > { %874 = dma.done.wait (%p1241_p3), %s267_s25, 64  }
  0x80   : > { %876 = vsyncadd (%p1241_p3), %s267_s25, 4294967232  ;;  %s279_s21 = scalar_lea.vmem [#allocation12], %s1130_s14  ;;  %s311_s17 = scalar_lea.vmem [#allocation13], %s1130_s14 }
  0x81   : > { %p606_p13 = scmp.ne.s32.totalorder %s895_s15, 0 }
  0x82   : > { %v328_v0 = vld [vmem:[%s261_s29] sm:$0x3] (!%p606_p13)  ;;  %v331_v1 = vld [vmem:[%s270_s22] sm:$0x3] (!%p606_p13)  ;;  %v916_v2 = vmov (!%p606_p13), 0.0   ;;  %vm351_vm0 = vcmask (!%p606_p13), 1041408  }
  0x83   : > { %322 = sbr.rel (%p606_p13) target bundleno = 175 (0xaf), region = 48  ;;  %327 = vst [vmem:[#allocation5] sm:$0x7] (!%p606_p13), %v916_v2  ;;  %705 = vlog2.f32 (!%p606_p13), %v328_v0  ;;  %v334_v3 = vld [vmem:[%s279_s21] sm:$0x3] (!%p606_p13) }
  0x84   : > { %707 = vlog2.f32 (!%p606_p13), %v331_v1 }
  0x85   : > { %709 = vlog2.f32 (!%p606_p13), %v334_v3 }
  0x8a   : > { %v371_v33 = vld [vmem:[#allocation5 + $0x2] sm:$0x1]  ;;  %v350_v34 = vld [vmem:[#allocation5] sm:$0x1]  ;;  %v361_v38 = vld [vmem:[#allocation5 + $0x1] sm:$0x1] }
  0x8d   : > { %v706_v4 = vpop.eup %705 }
  0x8e   : > { %v708_v5 = vpop.eup %707  ;;  %v330_v6 = vmul.f32 0.6931472, %v706_v4 }
  0x8f   : > { %v710_v7 = vpop.eup %709  ;;  %v333_v8 = vmul.f32 0.6931472, %v708_v5 }
  0x90   : > { %711 = vrcp.f32 %v330_v6  ;;  %v336_v9 = vmul.f32 0.6931472, %v710_v7 }
  0x91   : > { %713 = vrcp.f32 %v333_v8 }
  0x92   : > { %715 = vrcp.f32 %v336_v9 }
  0x9a   : > { %v712_v10 = vpop.eup %711 }
  0x9b   : > { %v714_v11 = vpop.eup %713  ;;  %v342_v12 = vmul.f32 %v712_v10, %v336_v9 }
  0x9c   : > { %v716_v13 = vpop.eup %715  ;;  %v338_v14 = vmul.f32 %v714_v11, %v330_v6 }
  0x9d   : > { %v340_v15 = vmul.f32 %v716_v13, %v333_v8  ;;  %349 = vst [vmem:[#allocation4] sm:$0x3] %v342_v12  ;;  %v372_v16 = vsel %vm351_vm0, %v342_v12, 0.0 }
  0x9e   : > { %345 = vst [vmem:[#allocation2] sm:$0x3] %v338_v14  ;;  %v352_v17 = vsel %vm351_vm0, %v338_v14, 0.0  ;;  %v373_v18 = vrot.slane %v372_v16, 4 }
  0x9f   : > { %v353_v19 = vrot.slane %v352_v17, 4  ;;  %347 = vst [vmem:[#allocation3] sm:$0x3] %v340_v15  ;;  %v362_v20 = vsel %vm351_vm0, %v340_v15, 0.0 }
  0xa0   : > { %v363_v21 = vrot.slane %v362_v20, 4  ;;  %v374_v22 = vadd.f32 %v373_v18, %v372_v16 }
  0xa1   : > { %v354_v23 = vadd.f32 %v353_v19, %v352_v17 }
  0xa2   : > { %v364_v24 = vadd.f32 %v363_v21, %v362_v20  ;;  %v375_v25 = vrot.slane %v374_v22, 2 }
  0xa3   : > { %v355_v26 = vrot.slane %v354_v23, 2 }
  0xa4   : > { %v365_v27 = vrot.slane %v364_v24, 2  ;;  %v376_v28 = vadd.f32 %v375_v25, %v374_v22 }
  0xa5   : > { %v356_v29 = vadd.f32 %v355_v26, %v354_v23 }
  0xa6   : > { %v366_v30 = vadd.f32 %v365_v27, %v364_v24  ;;  %v377_v31 = vrot.slane %v376_v28, 1 }
  0xa7   : > { %v357_v32 = vrot.slane %v356_v29, 1 }
  0xa8   : > { %v367_v35 = vrot.slane %v366_v30, 1  ;;  %v378_v36 = vadd.f32 %v377_v31, %v376_v28 }
  0xa9   : > { %v358_v37 = vadd.f32 %v357_v32, %v356_v29 }
  0xaa   : > { %v368_v39 = vadd.f32 %v367_v35, %v366_v30  ;;  %v379_v40 = vadd.f32 %v378_v36, %v371_v33 }
  0xab   : > { %v359_v41 = vadd.f32 %v358_v37, %v350_v34 }
  0xac   : > { %v369_v42 = vadd.f32 %v368_v39, %v361_v38  ;;  %380 = vst [vmem:[#allocation5 + $0x2] sm:$0x1] %v379_v40 }
  0xad   : > { %360 = vst [vmem:[#allocation5] sm:$0x1] %v359_v41 }
  0xae   : > { %370 = vst [vmem:[#allocation5 + $0x1] sm:$0x1] %v369_v42 }
  0xaf PF: > { %p607_p6 = scmp.ne.s32.totalorder %s895_s15, 1 }
  0xb0   : > { %vm390_vm1 = vcmask (!%p607_p6), 1042432   ;;  %v398_v47 = vld [vmem:[#allocation2] sm:$0x3] (!%p607_p6)  ;;  %v406_v48 = vld [vmem:[#allocation3] sm:$0x3] (!%p607_p6) }
  0xb1   : > { %384 = sbr.rel (%p607_p6) target bundleno = 344 (0x158), region = 56  ;;  %v414_v49 = vld [vmem:[#allocation4] sm:$0x3] (!%p607_p6) }
  0xb5   : > { %v389_v43 = vld [vmem:[#allocation5] sm:$0x7] (!%p607_p6) }
  0xb6   : > { %v391_v44 = vsel (!%p607_p6), %vm390_vm1, %v389_v43, 0.0 }
  0xb7   : > { %392 = vadd.xlane.f32.xlu0 (!%p607_p6), %v391_v44 }
 0x144   : > { %v393_v45 = vpop.xlane.xlu0 %392 }
 0x145   : > { %v394_v46 = vmul.f32 0.00390625, %v393_v45 }
 0x147   : > { %395 = vst [vmem:[#allocation6] sm:$0x7] %v394_v46 }
 0x14e   : > { %v608_v50 = vld [vmem:[#allocation6] ss:$0 sm:$0xff]  ;;  %v609_v51 = vld [vmem:[#allocation6 + $0x1] ss:$0 sm:$0xff]  ;;  %v610_v52 = vld [vmem:[#allocation6 + $0x2] ss:$0 sm:$0xff] }
 0x14f   : > { %v404_v53 = vsub.f32 %v398_v47, %v608_v50  ;;  %v412_v54 = vsub.f32 %v406_v48, %v609_v51  ;;  %v420_v55 = vsub.f32 %v414_v49, %v610_v52 }
 0x151   : > { %v421_v56 = vmul.f32 %v404_v53, %v404_v53  ;;  %v422_v57 = vmul.f32 %v412_v54, %v412_v54  ;;  %v424_v59 = vmul.f32 %v420_v55, %v420_v55 }
 0x153   : > { %v423_v58 = vadd.f32 %v422_v57, %v421_v56 }
 0x155   : > { %v425_v60 = vadd.f32 %v424_v59, %v423_v58 }
 0x157   : > { %426 = vst [vmem:[%s311_s17] sm:$0x3] %v425_v60 }
 0x158 PF: > { %s612_s15 = sshll.u32 %s899_s16, 5  ;;  %s443_s18 = sshll.u32 %s311_s17, 4  ;;  %s444_s18 = int_to_ptr.vmem [resolvable:$true] %s443_s18 }
 0x159   : > { %s1154_s28 = scalar_lea.hbm %s1207_s3, %s612_s15  ;;  %s428_s30 = scalar_lea.sflag [#allocation9], %s1127_s0 }
 0x15a   : > { %s809_s10 = scalar_lea.vmem %s444_s18, 32  ;;  %p1242_p1 = scmp.ne.s32.totalorder %s1227_s27, 0 }
 0x15b   : > { %p810_p7 = scmp.ne.s32.totalorder %s444_s18, %s809_s10  ;;  %s917_s9 = smov [#allocation13]  }
 0x15c   : > { %s813_s4 = sshll.u32 %s917_s9, 4  ;;  %s814_s4 = int_to_ptr.vmem [resolvable:$false] %s813_s4 }
 0x15d   : > { %p811_p5 = pnand %p810_p7, %p1242_p1  ;;  %s815_s8 = scalar_lea.vmem %s814_s4, 64 }
 0x15e   : > { %p816_p10 = scmp.lt.s32.totalorder %s444_s18, %s814_s4  ;;  %p817_p12 = scmp.lt.s32.totalorder %s815_s8, %s809_s10 }
 0x15f   : > { %p812_p9 = pneg %p811_p5 }
 0x160   : > { %p818_p11 = por %p817_p12, %p816_p10 }
 0x162   : > { %p819_p0 = pnand %p818_p11, %p812_p9 }
 0x164   : > { %822 = shalt.err (!%p819_p0)
}
 0x165   : > { %s823_s16 = scalar_lea.hbm %s1154_s28, 32  ;;  %s827_s6 = scalar_lea.hbm %s1207_s3, 64 }
 0x166   : > { %p824_p2 = scmp.ne.s32.totalorder %s1154_s28, %s823_s16  ;;  %p828_p3 = scmp.lt.u32.totalorder %s1154_s28, %s1207_s3 }
 0x167   : > { %p829_p13 = scmp.lt.u32.totalorder %s827_s6, %s823_s16  ;;  %p831_p7 = scmp.lt.u32.totalorder %s823_s16, %s1154_s28 }
 0x168   : > { %p825_p4 = pnand %p824_p2, %p1242_p1 }
 0x169   : > { %p830_p6 = por %p829_p13, %p828_p3 }
 0x16a   : > { %p826_p8 = pneg %p825_p4 }
 0x16b   : > { %p832_p5 = por %p831_p7, %p830_p6 }
 0x16d   : > { %p833_p9 = pnand %p832_p5, %p826_p8 }
 0x16f   : > { %836 = shalt.err (!%p833_p9)
}
 0x170   : > { %622 = dma.vmem_to_hbm [thread:$0]  (%p1242_p1), %s444_s18, 32, %s1154_s28, %s428_s30  }
 0x171 PF: > { %s1243_s0 = sld [smem:[#allocation22_spill]]  ;;  %p639_p10 = scmp.ge.s32.totalorder %s911_s19, 2 }
 0x172   : > { %s455_s14 = sand.u32 1, %s883_s12  }
 0x173   : > { %s456_s23 = scalar_lea.sflag [#allocation9], %s455_s14 }
 0x177   : > { %p1244_p12 = scmp.ne.s32.totalorder %s1243_s0, 0 }
 0x179   : > { %p635_p11 = pnand %p639_p10, %p1244_p12 }
 0x17b   : > { %878 = dma.done.wait (!%p635_p11), %s456_s23, 32  }
 0x17c   : > { %880 = vsyncadd (!%p635_p11), %s456_s23, 4294967264  ;;  %s22_s19 = sadd.s32 1, %s911_s19   ;;  %s1245_s29 = sld [smem:[#allocation17_spill]] }
 0x17d   : > { %p19_p0 = scmp.ge.s32.totalorder %s22_s19, 6   ;;  %s1246_s14 = sld [smem:[#allocation23_spill]] }
 0x17e   : > { %s1247_s15 = sld [smem:[#allocation18_spill]]  ;;  %s1248_s16 = sld [smem:[#allocation19_spill]] }
 0x17f   : > { %s1249_s17 = sld [smem:[#allocation20_spill]]  ;;  %s1250_s18 = sld [smem:[#allocation21_spill]] }
 0x180   : > { %s1251_s12 = smov %s887_s13  ;;  %21 = sbr.rel (!%p19_p0) target bundleno = 12 (0xc), region = 123 }
 0x182   : > { %s1252_s13 = smov %s1245_s29 }
 0x187   :  { %461 = vsyncpa [#allocation8], 1 }
 0x188   :  { %463 = vsyncpa [#allocation8 + $0x1], 1 }
 0x189   :  { %464 = vsyncpa [#allocation11], 1 }
 0x18a   :  { %466 = vsyncpa [#allocation11 + $0x1], 1 }
 0x18b   :  { %467 = vsyncpa [#allocation9], 1 }
 0x18c   :  { %469 = vsyncpa [#allocation9 + $0x1], 1 }

</bundles_post_ra>
